<compile_context>
chip_gen: v5e
topology: v5e:2x2
jax: 0.10.0
libtpu: 0.0.40
codegen_flags: <defaults>
</compile_context>

<pallas_src>
import functools

import jax
import jax.numpy as jnp
from jax.experimental import pallas as pl
from jax.experimental.pallas import tpu as pltpu

LN_EPS = 1e-5  # torch.nn.LayerNorm default


def _round_up(v, m):
    return -(-v // m) * m


def _linear_block_kernel(x_ref, w_ref, p_ref, o_ref, *, dout_real):
    # ---- Linear: x @ W^T + b (MXU matmul, f32 accumulation) ----
    h = jnp.dot(x_ref[...], w_ref[...], preferred_element_type=jnp.float32)
    h = h + p_ref[0:1, :]                         # bias row, [1, Dout_p]

    # ---- LayerNorm over the (real) feature axis, one-pass statistics ----
    # Padded feature columns of h are exactly 0 (W cols / bias padded with 0),
    # so sums over the padded axis equal sums over the real features.
    inv_d = 1.0 / float(dout_real)
    s1 = jnp.sum(h, axis=-1, keepdims=True)
    s2 = jnp.sum(h * h, axis=-1, keepdims=True)
    mean = s1 * inv_d
    var = jnp.maximum(s2 * inv_d - mean * mean, 0.0)
    hn = (h - mean) * jax.lax.rsqrt(var + LN_EPS)

    # ---- fused LN affine + FiLM (g_eff / beta_eff precomputed in wrapper) ----
    hn = hn * p_ref[1:2, :] + p_ref[2:3, :]

    # ---- SiLU ----
    out = hn * jax.nn.sigmoid(hn)

    # ---- Dropout: eval mode (p=0.0) is identity ----
    # TODO(synk): training-mode dropout needs pltpu.prng_seed/prng_random_bits.
    o_ref[...] = out.astype(o_ref.dtype)


def linear_block(x, w_t, b, gamma, beta, scale_shift=None, *,
                 block_m=512, matmul_dtype=None):
    """Fused LinearBlock forward.

    x:      [B, in_dim]
    w_t:    [in_dim, out_dim]   (transposed vs. PyTorch nn.Linear.weight)
    b, gamma, beta: [out_dim]
    scale_shift: optional (scale[out_dim], shift[out_dim])
    matmul_dtype: e.g. jnp.bfloat16 on v6e/v7x to halve matmul-operand traffic
                  (accumulation and the LN/SiLU epilogue stay f32).
    """
    B, Din = x.shape
    Din_w, Dout = w_t.shape
    assert Din_w == Din
    out_dtype = x.dtype

    # ---- fold FiLM into the LayerNorm affine (trace-time; O(Dout)) ----
    gamma = gamma.astype(jnp.float32)
    beta = beta.astype(jnp.float32)
    if scale_shift is None:
        g_eff, beta_eff = gamma, beta
    else:
        scale, shift = scale_shift
        s1 = scale.astype(jnp.float32) + 1.0
        g_eff = gamma * s1
        beta_eff = beta * s1 + shift.astype(jnp.float32)

    # ---- pad feature dims to the 128-lane width (lane-dense matmul/stores) ----
    Din_p = _round_up(Din, 128)
    Dout_p = _round_up(Dout, 128)
    if Din_p != Din:
        x = jnp.pad(x, ((0, 0), (0, Din_p - Din)))
        w_t = jnp.pad(w_t, ((0, Din_p - Din), (0, 0)))
    if Dout_p != Dout:
        w_t = jnp.pad(w_t, ((0, 0), (0, Dout_p - Dout)))

    def pad_feat(v):
        v = v.astype(jnp.float32)
        return jnp.pad(v, (0, Dout_p - Dout)) if Dout_p != Dout else v

    # ---- pack bias / g_eff / beta_eff into a single [8, Dout_p] block ----
    params = jnp.zeros((8, Dout_p), jnp.float32)
    params = params.at[0, :].set(pad_feat(b))
    params = params.at[1, :].set(pad_feat(g_eff))
    params = params.at[2, :].set(pad_feat(beta_eff))

    if matmul_dtype is not None:
        x = x.astype(matmul_dtype)
        w_t = w_t.astype(matmul_dtype)

    # ---- batch tile: multiple of 8 sublanes, as large as the batch allows ----
    bm = max(8, min(int(block_m), _round_up(B, 8)))
    grid = (pl.cdiv(B, bm),)

    itemsize = lambda a: jnp.dtype(a.dtype).itemsize
    cost = pl.CostEstimate(
        flops=2 * B * Din * Dout,
        transcendentals=B * Dout,                      # sigmoid exp
        bytes_accessed=(x.size * itemsize(x)
                        + w_t.size * itemsize(w_t)
                        + params.size * 4
                        + B * Dout_p * jnp.dtype(out_dtype).itemsize),
    )

    kernel = functools.partial(_linear_block_kernel, dout_real=Dout)

    out_p = pl.pallas_call(
        kernel,
        out_shape=jax.ShapeDtypeStruct((B, Dout_p), out_dtype),
        grid_spec=pltpu.PrefetchScalarGridSpec(
            num_scalar_prefetch=0,
            grid=grid,
            in_specs=[
                pl.BlockSpec((bm, Din_p), lambda i: (i, 0)),     # x tile
                pl.BlockSpec((Din_p, Dout_p), lambda i: (0, 0)),  # W^T (resident)
                pl.BlockSpec((8, Dout_p), lambda i: (0, 0)),      # packed params
            ],
            out_specs=pl.BlockSpec((bm, Dout_p), lambda i: (i, 0)),
        ),
        compiler_params=pltpu.CompilerParams(
            dimension_semantics=("parallel",)),
        cost_estimate=cost,
    )(x, w_t, params)

    return out_p[:, :Dout] if Dout_p != Dout else out_p


def _reference(x, w_t, b, gamma, beta, scale_shift=None):
    h = x @ w_t + b
    mean = jnp.mean(h, axis=-1, keepdims=True)
    var = jnp.mean((h - mean) ** 2, axis=-1, keepdims=True)
    hn = (h - mean) / jnp.sqrt(var + LN_EPS) * gamma + beta
    if scale_shift is not None:
        s, sh = scale_shift
        hn = hn * (s + 1.0) + sh
    return hn * jax.nn.sigmoid(hn)


if __name__ == "__main__":
    B, IN_DIM, OUT_DIM = 8, 32, 64

    key = jax.random.PRNGKey(0)
    kx, kw, kb, ks, ksh = jax.random.split(key, 5)

    # deterministic param init matching nn.Linear's U(-1/sqrt(in), 1/sqrt(in))
    bound = 1.0 / (IN_DIM ** 0.5)
    w_t = jax.random.uniform(kw, (IN_DIM, OUT_DIM), jnp.float32, -bound, bound)
    b = jax.random.uniform(kb, (OUT_DIM,), jnp.float32, -bound, bound)
    gamma = jnp.ones((OUT_DIM,), jnp.float32)    # nn.LayerNorm default
    beta = jnp.zeros((OUT_DIM,), jnp.float32)

    x = jax.random.normal(kx, (B, IN_DIM), jnp.float32)
    scale = 0.1 * jax.random.normal(ks, (OUT_DIM,), jnp.float32)
    shift = 0.1 * jax.random.normal(ksh, (OUT_DIM,), jnp.float32)

    # path 1: no scale_shift
    out0 = jax.block_until_ready(linear_block(x, w_t, b, gamma, beta))
    # path 2: with FiLM scale_shift
    out1 = jax.block_until_ready(
        linear_block(x, w_t, b, gamma, beta, scale_shift=(scale, shift)))

    ref0 = _reference(x, w_t, b, gamma, beta)
    ref1 = _reference(x, w_t, b, gamma, beta, scale_shift=(scale, shift))

    assert out0.shape == (B, OUT_DIM) and out1.shape == (B, OUT_DIM)
    assert jnp.allclose(out0, ref0, atol=1e-5, rtol=1e-5)
    assert jnp.allclose(out1, ref1, atol=1e-5, rtol=1e-5)

    print("KERNEL_OK")
</pallas_src>

<mosaic_0001>
module attributes {stable_mosaic.version = 11 : i64} {
  func.func @_linear_block_kernel(%arg0: i32, %arg1: memref<8x128xf32, #tpu.memory_space<vmem>>, %arg2: memref<128x128xf32, #tpu.memory_space<vmem>>, %arg3: memref<8x128xf32, #tpu.memory_space<vmem>>, %arg4: memref<8x128xf32, #tpu.memory_space<vmem>>) attributes {dimension_semantics = [#tpu.dimension_semantics<parallel>], iteration_bounds = array<i64: 1>, scalar_prefetch = 0 : i64, scratch_operands = 0 : i64, tpu.core_type = #tpu.core_type<tc>, window_params = [{transform_indices = @transform_0, window_bounds = array<i64: 8, 128>}, {pipeline_mode = #tpu.pipeline_mode<synchronous>, transform_indices = @transform_1, window_bounds = array<i64: 128, 128>}, {pipeline_mode = #tpu.pipeline_mode<synchronous>, transform_indices = @transform_2, window_bounds = array<i64: 8, 128>}, {transform_indices = @transform_3, window_bounds = array<i64: 8, 128>}]} {
    %c0 = arith.constant 0 : index
    %c0_0 = arith.constant 0 : index
    %0 = vector.load %arg1[%c0, %c0_0] : memref<8x128xf32, #tpu.memory_space<vmem>>, vector<8x128xf32>
    %c0_1 = arith.constant 0 : index
    %c0_2 = arith.constant 0 : index
    %1 = vector.load %arg2[%c0_1, %c0_2] : memref<128x128xf32, #tpu.memory_space<vmem>>, vector<128x128xf32>
    %cst = arith.constant dense<0.000000e+00> : vector<8x128xf32>
    %2 = tpu.matmul %0, %1, %cst {dimension_numbers = #tpu.dot_dimension_numbers<[1], [0], [0], [1], [0, 0, 1, 1], [], []>} : vector<8x128xf32>, vector<128x128xf32>, vector<8x128xf32> -> vector<8x128xf32>
    %c0_3 = arith.constant 0 : index
    %c0_4 = arith.constant 0 : index
    %3 = vector.load %arg3[%c0_3, %c0_4] : memref<8x128xf32, #tpu.memory_space<vmem>>, vector<1x128xf32>
    %4 = vector.broadcast %3 : vector<1x128xf32> to vector<8x128xf32>
    %5 = arith.addf %2, %4 : vector<8x128xf32>
    %cst_5 = arith.constant dense<0.000000e+00> : vector<8xf32>
    %6 = vector.multi_reduction <add>, %5, %cst_5 [1] : vector<8x128xf32> to vector<8xf32>
    %7 = vector.shape_cast %6 : vector<8xf32> to vector<8x1xf32>
    %8 = arith.mulf %5, %5 : vector<8x128xf32>
    %cst_6 = arith.constant dense<0.000000e+00> : vector<8xf32>
    %9 = vector.multi_reduction <add>, %8, %cst_6 [1] : vector<8x128xf32> to vector<8xf32>
    %10 = vector.shape_cast %9 : vector<8xf32> to vector<8x1xf32>
    %cst_7 = arith.constant 1.562500e-02 : f32
    %11 = vector.broadcast %cst_7 : f32 to vector<8x1xf32>
    %12 = arith.mulf %7, %11 : vector<8x1xf32>
    %cst_8 = arith.constant 1.562500e-02 : f32
    %13 = vector.broadcast %cst_8 : f32 to vector<8x1xf32>
    %14 = arith.mulf %10, %13 : vector<8x1xf32>
    %15 = arith.mulf %12, %12 : vector<8x1xf32>
    %16 = arith.subf %14, %15 : vector<8x1xf32>
    %cst_9 = arith.constant 0.000000e+00 : f32
    %17 = vector.broadcast %cst_9 : f32 to vector<8x1xf32>
    %18 = arith.maximumf %16, %17 : vector<8x1xf32>
    %19 = vector.broadcast %12 : vector<8x1xf32> to vector<8x128xf32>
    %20 = arith.subf %5, %19 : vector<8x128xf32>
    %cst_10 = arith.constant 9.99999974E-6 : f32
    %21 = vector.broadcast %cst_10 : f32 to vector<8x1xf32>
    %22 = arith.addf %18, %21 : vector<8x1xf32>
    %23 = math.rsqrt %22 : vector<8x1xf32>
    %24 = vector.broadcast %23 : vector<8x1xf32> to vector<8x128xf32>
    %25 = arith.mulf %20, %24 : vector<8x128xf32>
    %c1 = arith.constant 1 : index
    %c0_11 = arith.constant 0 : index
    %26 = vector.load %arg3[%c1, %c0_11] : memref<8x128xf32, #tpu.memory_space<vmem>>, vector<1x128xf32>
    %27 = vector.broadcast %26 : vector<1x128xf32> to vector<8x128xf32>
    %28 = arith.mulf %25, %27 : vector<8x128xf32>
    %c2 = arith.constant 2 : index
    %c0_12 = arith.constant 0 : index
    %29 = vector.load %arg3[%c2, %c0_12] : memref<8x128xf32, #tpu.memory_space<vmem>>, vector<1x128xf32>
    %30 = vector.broadcast %29 : vector<1x128xf32> to vector<8x128xf32>
    %31 = arith.addf %28, %30 : vector<8x128xf32>
    %32 = arith.negf %31 : vector<8x128xf32>
    %33 = math.exp %32 : vector<8x128xf32>
    %cst_13 = arith.constant 1.000000e+00 : f32
    %34 = vector.broadcast %cst_13 : f32 to vector<8x128xf32>
    %35 = arith.addf %34, %33 : vector<8x128xf32>
    %36 = arith.divf %34, %35 : vector<8x128xf32>
    %37 = arith.mulf %31, %36 : vector<8x128xf32>
    %c0_14 = arith.constant 0 : index
    %c0_15 = arith.constant 0 : index
    %38 = vector.load %arg4[%c0_14, %c0_15] : memref<8x128xf32, #tpu.memory_space<vmem>>, vector<8x128xf32>
    tpu.vector_store %arg4[%c0_14, %c0_15], %37 {strides = array<i32>} : memref<8x128xf32, #tpu.memory_space<vmem>>, vector<8x128xf32>,
    return
  }
  func.func @transform_0(%arg0: i32) -> (i32, i32) {
    %c0_i32 = arith.constant 0 : i32
    %c0_i32_0 = arith.constant 0 : i32
    return %arg0, %c0_i32 : i32, i32
  }
  func.func @transform_1(%arg0: i32) -> (i32, i32) {
    %c0_i32 = arith.constant 0 : i32
    %c0_i32_0 = arith.constant 0 : i32
    %c0_i32_1 = arith.constant 0 : i32
    return %c0_i32, %c0_i32_0 : i32, i32
  }
  func.func @transform_2(%arg0: i32) -> (i32, i32) {
    %c0_i32 = arith.constant 0 : i32
    %c0_i32_0 = arith.constant 0 : i32
    %c0_i32_1 = arith.constant 0 : i32
    return %c0_i32, %c0_i32_0 : i32, i32
  }
  func.func @transform_3(%arg0: i32) -> (i32, i32) {
    %c0_i32 = arith.constant 0 : i32
    %c0_i32_0 = arith.constant 0 : i32
    return %arg0, %c0_i32 : i32, i32
  }
}

</mosaic_0001>

<bundles_post_ra>
// kernel: tpu_custom_call.1
= control target key start
LH: loop header
LB: loop body
LE: loop exit
PB: predicated region body
PF: predicated region fallthrough
CT: control target
= control target key end

     0   :  { %8 = vsyncpa [#allocation3], 0  ;;  %s321_s0 = inlined_call_operand.hbm [shape: f32[8,128], index: 0, kind: input, shape index: {}]   ;;  %s322_s1 = inlined_call_operand.hbm [shape: f32[128,128], index: 1, kind: input, shape index: {}]   ;;  %s323_s2 = inlined_call_operand.hbm [shape: f32[8,128], index: 2, kind: input, shape index: {}]   ;;  %s324_s3 = inlined_call_operand.hbm [shape: f32[8,128], index: 3, kind: output, shape index: {}]  }
   0x1   :  { %9 = vsyncpa [#allocation6], 0  ;;  %s26_s14 = sshll.u32 %s322_s1, 4  ;;  %s27_s14 = int_to_ptr.hbm [resolvable:$true] %s26_s14 }
   0x2   :  { %10 = vsyncpa [#allocation4], 0  ;;  %s283_s15 = smov [#allocation5]   ;;  %s16_s19 = sshll.u32 %s321_s0, 4  ;;  %s17_s19 = int_to_ptr.hbm [resolvable:$true] %s16_s19 }
   0x3   :  { %s28_s16 = sshll.u32 %s283_s15, 4  ;;  %s284_s20 = smov 128   ;;  %s29_s16 = int_to_ptr.vmem [resolvable:$true] %s28_s16 }
   0x4   :  { %s285_s21 = smov 8   ;;  %s286_s22 = smov [#allocation2]  }
   0x5   :  { %34 = dma.hbm_to_vmem [thread:$0]  %s27_s14, 2048, %s29_s16, [#allocation6], %s284_s20, %s284_s20, %s285_s21  }
   0x6   :  { %s18_s23 = sshll.u32 %s286_s22, 4  ;;  %s40_s26 = sshll.u32 %s323_s2, 4  ;;  %s19_s23 = int_to_ptr.vmem [resolvable:$true] %s18_s23  ;;  %s41_s26 = int_to_ptr.hbm [resolvable:$true] %s40_s26 }
   0x7   :  { %21 = dma.hbm_to_vmem [thread:$0]  %s17_s19, 128, %s19_s23, [#allocation3]  }
   0x8   :  { %s287_s1 = smov [#allocation7]  }
   0x9   :  { %s42_s27 = sshll.u32 %s287_s1, 4  ;;  %s43_s27 = int_to_ptr.vmem [resolvable:$true] %s42_s27 }
   0xa   :  { %45 = dma.hbm_to_vmem [thread:$0]  %s41_s26, 128, %s43_s27, [#allocation6]  }
   0xb   :  { %277 = dma.done.wait [#allocation3], 128  }
   0xc   :  { %278 = vsyncadd [#allocation3], 4294967168 }
   0xd   :  { %279 = dma.done.wait [#allocation6], 2176  }
   0xe   :  { %280 = vsyncadd [#allocation6], 4294965120  ;;  %v74_v0 = vld [vmem:[#allocation5 + $0x78] sm:$0xff]  ;;  %v73_v1 = vld [vmem:[#allocation5 + $0x70] sm:$0xff]  ;;  %s288_s0 = smov [#allocation8]   ;;  %s154_s30 = sshll.u32 %s324_s3, 4  ;;  %s155_s30 = int_to_ptr.hbm [resolvable:$true] %s154_s30 }
   0xf   :  { %77 = vmatpush.msra.mxu0 %v74_v0  ;;  %v72_v2 = vld [vmem:[#allocation5 + $0x68] sm:$0xff]  ;;  %v71_v3 = vld [vmem:[#allocation5 + $0x60] sm:$0xff]  ;;  %v70_v4 = vld [vmem:[#allocation5 + $0x58] sm:$0xff]  ;;  %s152_s2 = sshll.u32 %s288_s0, 4  ;;  %s153_s2 = int_to_ptr.vmem [resolvable:$true] %s152_s2 }
  0x10   :  { %v69_v5 = vld [vmem:[#allocation5 + $0x50] sm:$0xff]  ;;  %v68_v6 = vld [vmem:[#allocation5 + $0x48] sm:$0xff]  ;;  %v67_v7 = vld [vmem:[#allocation5 + $0x40] sm:$0xff] }
  0x11   :  { %78 = vmatpush.msra.mxu0 %v73_v1  ;;  %v66_v8 = vld [vmem:[#allocation5 + $0x38] sm:$0xff]  ;;  %v65_v9 = vld [vmem:[#allocation5 + $0x30] sm:$0xff]  ;;  %v64_v10 = vld [vmem:[#allocation5 + $0x28] sm:$0xff] }
  0x12   :  { %v63_v11 = vld [vmem:[#allocation5 + $0x20] sm:$0xff]  ;;  %v62_v12 = vld [vmem:[#allocation5 + $0x18] sm:$0xff]  ;;  %v61_v13 = vld [vmem:[#allocation5 + $0x10] sm:$0xff] }
  0x13   :  { %79 = vmatpush.msra.mxu0 %v72_v2  ;;  %v60_v14 = vld [vmem:[#allocation5 + $0x8] sm:$0xff]  ;;  %v59_v15 = vld [vmem:[#allocation5] sm:$0xff]  ;;  %v58_v16 = vld [vmem:[#allocation2] sm:$0xff] }
  0x14   :  { %v172_v17 = vld [vmem:[#allocation7] ss:$0 sm:$0xff]  ;;  %v173_v36 = vld [vmem:[#allocation7 + $0x1] ss:$0 sm:$0xff]  ;;  %v174_v39 = vld [vmem:[#allocation7 + $0x2] ss:$0 sm:$0xff] }
  0x15   :  { %80 = vmatpush.msra.mxu0 %v71_v3 }
  0x17   :  { %81 = vmatpush.msra.mxu0 %v70_v4 }
  0x19   :  { %82 = vmatpush.msra.mxu0 %v69_v5 }
  0x1b   :  { %83 = vmatpush.msra.mxu0 %v68_v6 }
  0x1d   :  { %84 = vmatpush.msra.mxu0 %v67_v7 }
  0x1f   :  { %85 = vmatpush.msra.mxu0 %v66_v8 }
  0x21   :  { %86 = vmatpush.msra.mxu0 %v65_v9 }
  0x23   :  { %87 = vmatpush.msra.mxu0 %v64_v10 }
  0x25   :  { %88 = vmatpush.msra.mxu0 %v63_v11 }
  0x27   :  { %89 = vmatpush.msra.mxu0 %v62_v12 }
  0x29   :  { %90 = vmatpush.msra.mxu0 %v61_v13 }
  0x2b   :  { %91 = vmatpush.msra.mxu0 %v60_v14 }
  0x2d   :  { %92 = vmatpush.msra.mxu0 %v59_v15 }
  0x2e   :  { %93 = vmatmul.f32.vlgmr.msra.gmra.mxu0 %v58_v16 }
  0xab   :  { %v94_v18 = vpop.f32.mrf.mxu0 }
  0xac   :  { %v95_v19 = vadd.f32 %v172_v17, %v94_v18 }
  0xae   :  { %97 = vadd.xlane.f32.xlu0 %v95_v19  ;;  %v99_v20 = vmul.f32 %v95_v19, %v95_v19 }
  0xb6   :  { %100 = vadd.xlane.f32.xlu0 %v99_v20 }
 0x121   :  { %v98_v21 = vpop.xlane.xlu0 %97 }
 0x122   :  { %v102_v22 = vmul.f32 0.015625, %v98_v21 }
 0x124   :  { %v104_v24 = vmul.f32 %v102_v22, %v102_v22  ;;  %v107_v35 = vsub.f32 %v95_v19, %v102_v22 }
 0x129   :  { %v101_v23 = vpop.xlane.xlu0 %100 }
 0x12a   :  { %v103_v25 = vmul.f32 0.015625, %v101_v23 }
 0x12c   :  { %v105_v26 = vsub.f32 %v103_v25, %v104_v24 }
 0x12e   :  { %v106_v27 = vmax.f32 %v105_v26, 0.0 }
 0x130   :  { %v108_v28 = vadd.f32 1e-05, %v106_v27 }
 0x132   :  { %175 = vrsqrt.f32 %v108_v28  ;;  %vm115_vm1 = vweird.f32 %v108_v28 }
 0x138   :  { %v176_v29 = vpop.eup %175 }
 0x139   :  { %v110_v30 = vmul.f32 %v176_v29, %v108_v28  ;;  %vm116_vm0 = vweird.f32 %v176_v29 }
 0x13a   :  { %vm117_vm2 = vmor %vm115_vm1, %vm116_vm0 }
 0x13b   :  { %v111_v31 = vmul.f32 %v176_v29, %v110_v30 }
 0x13d   :  { %v112_v32 = vmul.f32 0.5, %v111_v31 }
 0x13f   :  { %v113_v33 = vsub.f32 1.5, %v112_v32 }
 0x141   :  { %v114_v34 = vmul.f32 %v176_v29, %v113_v33 }
 0x143   :  { %v118_v37 = vsel %vm117_vm2, %v176_v29, %v114_v34 }
 0x144   :  { %v119_v38 = vmul.f32 %v118_v37, %v107_v35 }
 0x146   :  { %v122_v40 = vmul.f32 %v173_v36, %v119_v38 }
 0x148   :  { %v125_v41 = vadd.f32 %v174_v39, %v122_v40 }
 0x14a   :  { %v165_v42 = vmul.f32 -1.442695, %v125_v41 }
 0x14c   :  { %177 = vpow2.f32 %v165_v42 }
 0x152   :  { %v178_v43 = vpop.eup %177 }
 0x153   :  { %v129_v44 = vadd.f32 1.0, %v178_v43 }
 0x155   :  { %179 = vrcp.f32 %v129_v44  ;;  %v141_v48 = vand.u32 2147483648, %v129_v44  ;;  %v139_v50 = vand.u32 2147483647, %v129_v44  ;;  %vm135_vm4 = vweird.f32 %v129_v44 }
 0x157   :  { %v142_v52 = vor.u32 1.1754944e-38, %v141_v48  ;;  %vm140_vm6 = vcmp.eq.f32.partialorder %v139_v50, 8.507059e+37 }
 0x15b   :  { %v180_v45 = vpop.eup %179 }
 0x15c   :  { %v131_v46 = vmul.f32 %v180_v45, %v129_v44  ;;  %vm136_vm3 = vweird.f32 %v180_v45 }
 0x15d   :  { %vm137_vm5 = vmor %vm135_vm4, %vm136_vm3 }
 0x15e   :  { %v132_v47 = vsub.f32 1.0, %v131_v46 }
 0x160   :  { %v133_v49 = vmul.f32 %v180_v45, %v132_v47 }
 0x162   :  { %v134_v51 = vadd.f32 %v180_v45, %v133_v49 }
 0x164   :  { %v138_v53 = vsel %vm137_vm5, %v180_v45, %v134_v51 }
 0x165   :  { %v143_v54 = vsel %vm140_vm6, %v142_v52, %v138_v53 }
 0x166   :  { %v145_v55 = vmul.f32 %v143_v54, %v125_v41 }
 0x168   :  { %146 = vst [vmem:[#allocation8] sm:$0xff] %v145_v55 }
 0x169   :  { %157 = dma.vmem_to_hbm [thread:$0]  %s153_s2, 128, %s155_s30, [#allocation4]  }
 0x16a   :  { %281 = dma.done.wait [#allocation4], 128  }
 0x16b   :  { %282 = vsyncadd [#allocation4], 4294967168 }
 0x16c   :  { %162 = vsyncpa [#allocation3], 1 }
 0x16d   :  { %163 = vsyncpa [#allocation6], 1 }
 0x16e   :  { %164 = vsyncpa [#allocation4], 1 }

</bundles_post_ra>
